<compile_context>
chip_gen: v7x
topology: tpu7x:2x2x1
jax: 0.10.0
libtpu: 0.0.40
codegen_flags: <defaults>
</compile_context>

<pallas_src>
import functools

import numpy as np
import jax
import jax.numpy as jnp
from jax.experimental import pallas as pl
from jax.experimental.pallas import tpu as pltpu


def _round_up(x, m):
    return (x + m - 1) // m * m


def _l2norm(x):
    # torch.nn.functional.normalize(x, dim=1, p=2, eps=1e-12)
    # == x / max(||x||, 1e-12) == x * rsqrt(max(||x||^2, 1e-24))
    ss = jnp.sum(x * x, axis=1, keepdims=True)
    return x * jax.lax.rsqrt(jnp.maximum(ss, 1e-24))


def _nm_infonce_kernel(anch_ref, other_ref, negs_ref, loss_ref, gn_ref, acc_ref, *,
                       inv_t, n_anchor, tile_m, neg_per_view):
    """Per anchor tile: normalize, pos dot, anchors x negatives exp-logits,
    index-masked negative sum, partial loss accumulation."""
    t = pl.program_id(0)

    @pl.when(t == 0)
    def _():
        acc_ref[...] = jnp.zeros_like(acc_ref)
        # Normalize the (resident) negative block once; reused by every tile.
        gn_ref[...] = _l2norm(negs_ref[...].astype(jnp.float32))

    a = _l2norm(anch_ref[...].astype(jnp.float32))    # (TM, D) anchor rows
    o = _l2norm(other_ref[...].astype(jnp.float32))   # (TM, D) paired other-view rows
    g = gn_ref[...]                                   # (M, D)  normalized negatives

    # positive term: keep the logit so log(pos) is exact (log(exp(x)) == x)
    pos_logit = jnp.sum(a * o, axis=1, keepdims=True) * inv_t          # (TM, 1)
    pos = jnp.exp(pos_logit)

    # negative term: exp-similarities against the negative block only (f32 MXU)
    logits = jax.lax.dot_general(a, g, (((1,), (1,)), ((), ())),
                                 preferred_element_type=jnp.float32)   # (TM, M)
    sim = jnp.exp(logits * inv_t)

    # Exclude the two negatives paired with this anchor's image: for global
    # anchor row r, image index i = r mod b -> negative columns i and i + b.
    row = jax.lax.broadcasted_iota(jnp.int32, (tile_m, 1), 0) + t * tile_m
    img = jax.lax.rem(row, neg_per_view)                               # (TM, 1)
    col = jax.lax.broadcasted_iota(jnp.int32, sim.shape, 1)            # (TM, M)
    excl = (col == img) | (col == img + neg_per_view)
    neg = jnp.sum(jnp.where(excl, 0.0, sim), axis=1, keepdims=True)    # (TM, 1)

    # log(pos/(pos+neg)) = pos_logit - log(pos+neg); rows past n_anchor are
    # zero padding and contribute 0.
    valid = row < n_anchor
    log_term = jnp.where(valid, pos_logit - jnp.log(pos + neg), 0.0)
    acc_ref[...] += jnp.sum(log_term, keepdims=True)

    @pl.when(t == pl.num_programs(0) - 1)
    def _():
        # TODO(synk): on v7x, per-tile partial outputs marked "parallel" would
        # let both TensorCores split the grid; kept serial here for simplicity.
        loss_ref[...] = -acc_ref[...] * (1.0 / n_anchor)


def negative_mining_info_nce_loss(pos0, pos1, neg0, neg1, temperature=0.1):
    """Glue in plain JAX: build anchor/other/negative blocks, call the kernel."""
    b, d = pos0.shape
    anchors = jnp.concatenate([pos0, pos1], axis=0).astype(jnp.float32)  # (2b, D)
    others = jnp.concatenate([pos1, pos0], axis=0).astype(jnp.float32)   # (2b, D)
    negs = jnp.concatenate([neg0, neg1], axis=0).astype(jnp.float32)     # (2b, D)

    n_anchor = 2 * b          # rows that actually contribute to the loss
    m = 2 * b                 # number of negatives

    # Anchor tile: multiple of 8 sublanes; 256 rows for large batches so the
    # MXU sees well-shaped tiles and VMEM stays bounded independent of N.
    tm = _round_up(n_anchor, 8) if n_anchor <= 256 else 256
    a_pad = _round_up(n_anchor, tm)
    if a_pad != n_anchor:
        pad = a_pad - n_anchor
        anchors = jnp.pad(anchors, ((0, pad), (0, 0)))
        others = jnp.pad(others, ((0, pad), (0, 0)))
    grid = a_pad // tm

    kernel = functools.partial(
        _nm_infonce_kernel,
        inv_t=float(1.0 / temperature),
        n_anchor=int(n_anchor),
        tile_m=int(tm),
        neg_per_view=int(b),
    )

    # Advisory cost estimate + VMEM sizing (clamped to v7x's 64 MiB).
    flops = 2 * a_pad * m * d + 10 * (a_pad + m) * d
    transcendentals = a_pad * m + a_pad
    bytes_accessed = 4 * (2 * a_pad * d + m * d) + 4
    work_bytes = 4 * (2 * 2 * tm * d    # anchor + other, double-buffered
                      + 2 * m * d       # raw negatives (resident, 2 bufs worst case)
                      + m * d           # normalized-negatives scratch
                      + 4 * tm * m      # sim / mask intermediates
                      + 8 * tm)
    vmem_limit = int(min(max(2 * work_bytes, 32 * 1024 * 1024),
                         64 * 1024 * 1024))

    loss = pl.pallas_call(
        kernel,
        out_shape=jax.ShapeDtypeStruct((1, 1), jnp.float32),
        grid=(grid,),
        in_specs=[
            pl.BlockSpec((tm, d), lambda t: (t, 0)),  # anchor tile (pipelined)
            pl.BlockSpec((tm, d), lambda t: (t, 0)),  # paired other-view tile
            pl.BlockSpec((m, d), lambda t: (0, 0)),   # negatives: resident block
        ],
        out_specs=pl.BlockSpec((1, 1), lambda t: (0, 0)),
        scratch_shapes=[
            pltpu.VMEM((m, d), jnp.float32),          # normalized negatives
            pltpu.VMEM((1, 1), jnp.float32),          # loss accumulator
        ],
        compiler_params=pltpu.CompilerParams(
            dimension_semantics=("arbitrary",),
            vmem_limit_bytes=vmem_limit,
        ),
        cost_estimate=pl.CostEstimate(
            flops=int(flops),
            transcendentals=int(transcendentals),
            bytes_accessed=int(bytes_accessed),
        ),
    )(anchors, others, negs)
    return loss[0, 0]


def build_masks(per_view_batch):
    """precompute_pos_neg_mask() specialized to world_size=1, rank=0, num_pos=2.
    Used only by the pure-JAX reference to validate the mask-free kernel."""
    b = per_view_batch
    n = 4 * b
    pos_mask = np.zeros((n, n), np.float32)
    neg_mask = np.zeros((n, n), np.float32)
    for anchor in range(2):
        other = 1 - anchor
        for i in range(b):
            row = anchor * b + i
            pos_mask[row, other * b + i] = 1.0
            for c in range(2 * b, 4 * b):
                if c != 2 * b + i and c != 3 * b + i:
                    neg_mask[row, c] = 1.0
    return jnp.asarray(pos_mask), jnp.asarray(neg_mask)


def _reference(pos0, pos1, neg0, neg1, pos_mask, neg_mask, temperature=0.1):
    """Pure-JAX transcription of the PyTorch forward (mask-based)."""
    e = jnp.concatenate([pos0, pos1, neg0, neg1], axis=0).astype(jnp.float32)
    e = e / jnp.maximum(jnp.linalg.norm(e, axis=1, keepdims=True), 1e-12)
    sim = jnp.exp(e @ e.T / temperature)
    pos = jnp.sum(sim * pos_mask, axis=1)
    neg = jnp.sum(sim * neg_mask, axis=1)
    half = e.shape[0] // 2
    pos, neg = pos[:half], neg[:half]
    return -jnp.mean(jnp.log(pos / (pos + neg)))


if __name__ == "__main__":
    # Module config: embedding_dim=32, batch_size=4 (per view), world_size=1,
    # gather_distributed=False, temperature=0.1
    per_view_batch, embedding_dim = 4, 32
    temperature = 0.1

    key = jax.random.PRNGKey(0)
    k0, k1, k2, k3 = jax.random.split(key, 4)
    pos0 = jax.random.normal(k0, (per_view_batch, embedding_dim), jnp.float32)
    pos1 = jax.random.normal(k1, (per_view_batch, embedding_dim), jnp.float32)
    neg0 = jax.random.normal(k2, (per_view_batch, embedding_dim), jnp.float32)
    neg1 = jax.random.normal(k3, (per_view_batch, embedding_dim), jnp.float32)

    loss = negative_mining_info_nce_loss(pos0, pos1, neg0, neg1, temperature)
    jax.block_until_ready(loss)

    pos_mask, neg_mask = build_masks(per_view_batch)
    ref = _reference(pos0, pos1, neg0, neg1, pos_mask, neg_mask, temperature)
    if not np.isclose(float(loss), float(ref), rtol=1e-4, atol=1e-5):
        raise AssertionError(f"mismatch: kernel={float(loss)} ref={float(ref)}")

    print("KERNEL_OK")
</pallas_src>

<mosaic_0001>
module attributes {stable_mosaic.version = 11 : i64} {
  func.func @_nm_infonce_kernel(%arg0: i32, %arg1: memref<8x32xf32, #tpu.memory_space<vmem>>, %arg2: memref<8x32xf32, #tpu.memory_space<vmem>>, %arg3: memref<8x32xf32, #tpu.memory_space<vmem>>, %arg4: memref<1x1xf32, #tpu.memory_space<vmem>>, %arg5: memref<8x32xf32, #tpu.memory_space<vmem>>, %arg6: memref<1x1xf32, #tpu.memory_space<vmem>>) attributes {dimension_semantics = [#tpu.dimension_semantics<arbitrary>], iteration_bounds = array<i64: 1>, scalar_prefetch = 0 : i64, scratch_operands = 2 : i64, tpu.core_type = #tpu.core_type<tc>, window_params = [{transform_indices = @transform_0, window_bounds = array<i64: 8, 32>}, {transform_indices = @transform_1, window_bounds = array<i64: 8, 32>}, {pipeline_mode = #tpu.pipeline_mode<synchronous>, transform_indices = @transform_2, window_bounds = array<i64: 8, 32>}, {pipeline_mode = #tpu.pipeline_mode<synchronous>, transform_indices = @transform_3, window_bounds = array<i64: 1, 1>}]} {
    %c0_i32 = arith.constant 0 : i32
    %0 = arith.cmpi eq, %arg0, %c0_i32 : i32
    %1 = arith.extui %0 : i1 to i32
    %c0_i32_0 = arith.constant 0 : i32
    %2 = arith.cmpi ne, %1, %c0_i32_0 : i32
    scf.if %2 {
      %cst_25 = arith.constant 0.000000e+00 : f32
      %68 = vector.broadcast %cst_25 : f32 to vector<1x1xf32>
      %c0_26 = arith.constant 0 : index
      %c0_27 = arith.constant 0 : index
      %69 = vector.load %arg6[%c0_26, %c0_27] : memref<1x1xf32, #tpu.memory_space<vmem>>, vector<1x1xf32>
      tpu.vector_store %arg6[%c0_26, %c0_27], %68 {strides = array<i32>} : memref<1x1xf32, #tpu.memory_space<vmem>>, vector<1x1xf32>,
      %c0_28 = arith.constant 0 : index
      %c0_29 = arith.constant 0 : index
      %70 = vector.load %arg3[%c0_28, %c0_29] : memref<8x32xf32, #tpu.memory_space<vmem>>, vector<8x32xf32>
      %71 = arith.mulf %70, %70 : vector<8x32xf32>
      %cst_30 = arith.constant dense<0.000000e+00> : vector<8xf32>
      %72 = vector.multi_reduction <add>, %71, %cst_30 [1] : vector<8x32xf32> to vector<8xf32>
      %73 = vector.shape_cast %72 : vector<8xf32> to vector<8x1xf32>
      %cst_31 = arith.constant 1.000000e-24 : f32
      %74 = vector.broadcast %cst_31 : f32 to vector<8x1xf32>
      %75 = arith.maximumf %73, %74 : vector<8x1xf32>
      %76 = math.rsqrt %75 : vector<8x1xf32>
      %77 = vector.broadcast %76 : vector<8x1xf32> to vector<8x32xf32>
      %78 = arith.mulf %70, %77 : vector<8x32xf32>
      %c0_32 = arith.constant 0 : index
      %c0_33 = arith.constant 0 : index
      %79 = vector.load %arg5[%c0_32, %c0_33] : memref<8x32xf32, #tpu.memory_space<vmem>>, vector<8x32xf32>
      tpu.vector_store %arg5[%c0_32, %c0_33], %78 {strides = array<i32>} : memref<8x32xf32, #tpu.memory_space<vmem>>, vector<8x32xf32>,
    } else {
    }
    %c0 = arith.constant 0 : index
    %c0_1 = arith.constant 0 : index
    %3 = vector.load %arg1[%c0, %c0_1] : memref<8x32xf32, #tpu.memory_space<vmem>>, vector<8x32xf32>
    %4 = arith.mulf %3, %3 : vector<8x32xf32>
    %cst = arith.constant dense<0.000000e+00> : vector<8xf32>
    %5 = vector.multi_reduction <add>, %4, %cst [1] : vector<8x32xf32> to vector<8xf32>
    %6 = vector.shape_cast %5 : vector<8xf32> to vector<8x1xf32>
    %cst_2 = arith.constant 1.000000e-24 : f32
    %7 = vector.broadcast %cst_2 : f32 to vector<8x1xf32>
    %8 = arith.maximumf %6, %7 : vector<8x1xf32>
    %9 = math.rsqrt %8 : vector<8x1xf32>
    %10 = vector.broadcast %9 : vector<8x1xf32> to vector<8x32xf32>
    %11 = arith.mulf %3, %10 : vector<8x32xf32>
    %c0_3 = arith.constant 0 : index
    %c0_4 = arith.constant 0 : index
    %12 = vector.load %arg2[%c0_3, %c0_4] : memref<8x32xf32, #tpu.memory_space<vmem>>, vector<8x32xf32>
    %13 = arith.mulf %12, %12 : vector<8x32xf32>
    %cst_5 = arith.constant dense<0.000000e+00> : vector<8xf32>
    %14 = vector.multi_reduction <add>, %13, %cst_5 [1] : vector<8x32xf32> to vector<8xf32>
    %15 = vector.shape_cast %14 : vector<8xf32> to vector<8x1xf32>
    %cst_6 = arith.constant 1.000000e-24 : f32
    %16 = vector.broadcast %cst_6 : f32 to vector<8x1xf32>
    %17 = arith.maximumf %15, %16 : vector<8x1xf32>
    %18 = math.rsqrt %17 : vector<8x1xf32>
    %19 = vector.broadcast %18 : vector<8x1xf32> to vector<8x32xf32>
    %20 = arith.mulf %12, %19 : vector<8x32xf32>
    %c0_7 = arith.constant 0 : index
    %c0_8 = arith.constant 0 : index
    %21 = vector.load %arg5[%c0_7, %c0_8] : memref<8x32xf32, #tpu.memory_space<vmem>>, vector<8x32xf32>
    %22 = arith.mulf %11, %20 : vector<8x32xf32>
    %cst_9 = arith.constant dense<0.000000e+00> : vector<8xf32>
    %23 = vector.multi_reduction <add>, %22, %cst_9 [1] : vector<8x32xf32> to vector<8xf32>
    %24 = vector.shape_cast %23 : vector<8xf32> to vector<8x1xf32>
    %cst_10 = arith.constant 1.000000e+01 : f32
    %25 = vector.broadcast %cst_10 : f32 to vector<8x1xf32>
    %26 = arith.mulf %24, %25 : vector<8x1xf32>
    %27 = math.exp %26 : vector<8x1xf32>
    %cst_11 = arith.constant dense<0.000000e+00> : vector<8x8xf32>
    %28 = tpu.matmul %11, %21, %cst_11 {dimension_numbers = #tpu.dot_dimension_numbers<[1], [1], [0], [0], [0, 0, 1, 0], [], []>} : vector<8x32xf32>, vector<8x32xf32>, vector<8x8xf32> -> vector<8x8xf32>
    %cst_12 = arith.constant 1.000000e+01 : f32
    %29 = vector.broadcast %cst_12 : f32 to vector<8x8xf32>
    %30 = arith.mulf %28, %29 : vector<8x8xf32>
    %31 = math.exp %30 : vector<8x8xf32>
    %32 = tpu.iota {dimensions = array<i32: 0>} : vector<8x1xi32>
    %c8_i32 = arith.constant 8 : i32
    %33 = arith.muli %arg0, %c8_i32 : i32
    %34 = vector.broadcast %33 : i32 to vector<8x1xi32>
    %35 = arith.addi %32, %34 : vector<8x1xi32>
    %c4_i32 = arith.constant 4 : i32
    %36 = vector.broadcast %c4_i32 : i32 to vector<8x1xi32>
    %37 = arith.remsi %35, %36 : vector<8x1xi32>
    %38 = tpu.iota {dimensions = array<i32: 1>} : vector<8x8xi32>
    %39 = vector.broadcast %37 : vector<8x1xi32> to vector<8x8xi32>
    %40 = arith.cmpi eq, %38, %39 : vector<8x8xi32>
    %c4_i32_13 = arith.constant 4 : i32
    %41 = vector.broadcast %c4_i32_13 : i32 to vector<8x1xi32>
    %42 = arith.addi %37, %41 : vector<8x1xi32>
    %43 = vector.broadcast %42 : vector<8x1xi32> to vector<8x8xi32>
    %44 = arith.cmpi eq, %38, %43 : vector<8x8xi32>
    %45 = arith.ori %40, %44 : vector<8x8xi1>
    %cst_14 = arith.constant 0.000000e+00 : f32
    %46 = vector.broadcast %cst_14 : f32 to vector<8x8xf32>
    %47 = arith.select %45, %46, %31 : vector<8x8xi1>, vector<8x8xf32>
    %cst_15 = arith.constant dense<0.000000e+00> : vector<8xf32>
    %48 = vector.multi_reduction <add>, %47, %cst_15 [1] : vector<8x8xf32> to vector<8xf32>
    %49 = vector.shape_cast %48 : vector<8xf32> to vector<8x1xf32>
    %c8_i32_16 = arith.constant 8 : i32
    %50 = vector.broadcast %c8_i32_16 : i32 to vector<8x1xi32>
    %51 = arith.cmpi slt, %35, %50 : vector<8x1xi32>
    %52 = arith.addf %27, %49 : vector<8x1xf32>
    %53 = math.log %52 : vector<8x1xf32>
    %54 = arith.subf %26, %53 : vector<8x1xf32>
    %cst_17 = arith.constant 0.000000e+00 : f32
    %55 = vector.broadcast %cst_17 : f32 to vector<8x1xf32>
    %56 = arith.select %51, %54, %55 : vector<8x1xi1>, vector<8x1xf32>
    %c0_18 = arith.constant 0 : index
    %c0_19 = arith.constant 0 : index
    %57 = vector.load %arg6[%c0_18, %c0_19] : memref<1x1xf32, #tpu.memory_space<vmem>>, vector<1x1xf32>
    %58 = vector.shape_cast %56 : vector<8x1xf32> to vector<1x8x1xf32>
    %cst_20 = arith.constant dense<0.000000e+00> : vector<1xf32>
    %59 = vector.multi_reduction <add>, %58, %cst_20 [1, 2] : vector<1x8x1xf32> to vector<1xf32>
    %60 = vector.shape_cast %59 : vector<1xf32> to vector<1x1x1xf32>
    %61 = vector.extract %60[0, 0, 0] : f32 from vector<1x1x1xf32>
    %62 = vector.broadcast %61 : f32 to vector<1x1xf32>
    %63 = arith.addf %57, %62 : vector<1x1xf32>
    %c0_21 = arith.constant 0 : index
    %c0_22 = arith.constant 0 : index
    %64 = vector.load %arg6[%c0_21, %c0_22] : memref<1x1xf32, #tpu.memory_space<vmem>>, vector<1x1xf32>
    tpu.vector_store %arg6[%c0_21, %c0_22], %63 {strides = array<i32>} : memref<1x1xf32, #tpu.memory_space<vmem>>, vector<1x1xf32>,
    %c0_i32_23 = arith.constant 0 : i32
    %65 = arith.cmpi eq, %arg0, %c0_i32_23 : i32
    %66 = arith.extui %65 : i1 to i32
    %c0_i32_24 = arith.constant 0 : i32
    %67 = arith.cmpi ne, %66, %c0_i32_24 : i32
    scf.if %67 {
      %c0_25 = arith.constant 0 : index
      %c0_26 = arith.constant 0 : index
      %68 = vector.load %arg6[%c0_25, %c0_26] : memref<1x1xf32, #tpu.memory_space<vmem>>, vector<1x1xf32>
      %cst_27 = arith.constant 0.000000e+00 : f32
      %69 = vector.broadcast %cst_27 : f32 to vector<1x1xf32>
      %70 = arith.subf %69, %68 : vector<1x1xf32>
      %cst_28 = arith.constant 1.250000e-01 : f32
      %71 = vector.broadcast %cst_28 : f32 to vector<1x1xf32>
      %72 = arith.mulf %70, %71 : vector<1x1xf32>
      %c0_29 = arith.constant 0 : index
      %c0_30 = arith.constant 0 : index
      %73 = vector.load %arg4[%c0_29, %c0_30] : memref<1x1xf32, #tpu.memory_space<vmem>>, vector<1x1xf32>
      tpu.vector_store %arg4[%c0_29, %c0_30], %72 {strides = array<i32>} : memref<1x1xf32, #tpu.memory_space<vmem>>, vector<1x1xf32>,
    } else {
    }
    return
  }
  func.func @transform_0(%arg0: i32) -> (i32, i32) {
    %c0_i32 = arith.constant 0 : i32
    %c0_i32_0 = arith.constant 0 : i32
    return %arg0, %c0_i32 : i32, i32
  }
  func.func @transform_1(%arg0: i32) -> (i32, i32) {
    %c0_i32 = arith.constant 0 : i32
    %c0_i32_0 = arith.constant 0 : i32
    return %arg0, %c0_i32 : i32, i32
  }
  func.func @transform_2(%arg0: i32) -> (i32, i32) {
    %c0_i32 = arith.constant 0 : i32
    %c0_i32_0 = arith.constant 0 : i32
    %c0_i32_1 = arith.constant 0 : i32
    return %c0_i32, %c0_i32_0 : i32, i32
  }
  func.func @transform_3(%arg0: i32) -> (i32, i32) {
    %c0_i32 = arith.constant 0 : i32
    %c0_i32_0 = arith.constant 0 : i32
    %c0_i32_1 = arith.constant 0 : i32
    return %c0_i32, %c0_i32_0 : i32, i32
  }
}

</mosaic_0001>

<bundles_post_ra>
// kernel: tpu_custom_call.1
= control target key start
LH: loop header
LB: loop body
LE: loop exit
PB: predicated region body
PF: predicated region fallthrough
CT: control target
= control target key end

     0   :  { %8 = vsyncpa [#allocation5], 0  ;;  %s445_s0 = inlined_call_operand.hbm [shape: f32[8,32], index: 0, kind: input, shape index: {}]   ;;  %s446_s1 = inlined_call_operand.hbm [shape: f32[8,32], index: 1, kind: input, shape index: {}]   ;;  %s447_s2 = inlined_call_operand.hbm [shape: f32[8,32], index: 2, kind: input, shape index: {}]   ;;  %s448_s3 = inlined_call_operand.hbm [shape: f32[1,1], index: 3, kind: output, shape index: {}]  }
   0x1   :  { %9 = vsyncpa [#allocation8], 0 }
   0x2   :  { %10 = vsyncpa [#allocation6], 0  ;;  %s361_s12 = smov [#allocation7]   ;;  %s362_s14 = smov [#allocation4]  }
   0x3   :  { %s27_s13 = sshll.u32 %s361_s12, 4  ;;  %s17_s15 = sshll.u32 %s362_s14, 4  ;;  %s28_s13 = int_to_ptr.vmem [resolvable:$true] %s27_s13  ;;  %s18_s15 = int_to_ptr.vmem [resolvable:$true] %s17_s15 }
   0x4   :  { %s267_s18 = scalar_lea.hbm %s446_s1, 128 }
   0x5   :  { %p268_p0 = scmp.ne.s32.totalorder %s446_s1, %s267_s18  ;;  %p271_p1 = scmp.lt.u32.totalorder %s267_s18, %s446_s1 }
   0x7   :  { %p273_p2 = pnand %p271_p1, %p268_p0 }
   0x9   :  { %276 = shalt.err (!%p273_p2)
}
   0xa   :  { %s277_s23 = scalar_lea.vmem %s28_s13, 128  ;;  %p282_p4 = scmp.lt.s32.totalorder %s28_s13, %s28_s13 }
   0xb   :  { %p278_p3 = scmp.ne.s32.totalorder %s28_s13, %s277_s23  ;;  %p283_p5 = scmp.lt.s32.totalorder %s277_s23, %s277_s23 }
   0xd   :  { %p284_p6 = por %p283_p5, %p282_p4 }
   0xf   :  { %p285_p7 = pnand %p284_p6, %p278_p3 }
  0x11   :  { %288 = shalt.err (!%p285_p7)
}
  0x12   :  { %30 = dma.hbm_to_vmem [thread:$0]  %s446_s1, 128, %s28_s13, [#allocation8]  }
  0x13   :  { %s289_s28 = scalar_lea.hbm %s445_s0, 128 }
  0x14   :  { %p290_p8 = scmp.ne.s32.totalorder %s445_s0, %s289_s28  ;;  %p293_p9 = scmp.lt.u32.totalorder %s289_s28, %s445_s0 }
  0x16   :  { %p295_p10 = pnand %p293_p9, %p290_p8 }
  0x18   :  { %298 = shalt.err (!%p295_p10)
}
  0x19   :  { %s299_s6 = scalar_lea.vmem %s18_s15, 128  ;;  %p304_p12 = scmp.lt.s32.totalorder %s18_s15, %s18_s15 }
  0x1a   :  { %p300_p11 = scmp.ne.s32.totalorder %s18_s15, %s299_s6  ;;  %p305_p13 = scmp.lt.s32.totalorder %s299_s6, %s299_s6 }
  0x1c   :  { %p306_p0 = por %p305_p13, %p304_p12 }
  0x1e   :  { %p307_p1 = pnand %p306_p0, %p300_p11 }
  0x20   :  { %310 = shalt.err (!%p307_p1)
}
  0x21   :  { %20 = dma.hbm_to_vmem [thread:$0]  %s445_s0, 128, %s18_s15, [#allocation5]  }
  0x22   :  { %s363_s8 = smov [#allocation9]   ;;  %s311_s12 = scalar_lea.hbm %s447_s2, 128 }
  0x23   :  { %s37_s9 = sshll.u32 %s363_s8, 4  ;;  %p312_p2 = scmp.ne.s32.totalorder %s447_s2, %s311_s12  ;;  %s38_s9 = int_to_ptr.vmem [resolvable:$true] %s37_s9 }
  0x24   :  { %p315_p3 = scmp.lt.u32.totalorder %s311_s12, %s447_s2 }
  0x26   :  { %p317_p4 = pnand %p315_p3, %p312_p2 }
  0x28   :  { %320 = shalt.err (!%p317_p4)
}
  0x29   :  { %s321_s18 = scalar_lea.vmem %s38_s9, 128  ;;  %p326_p6 = scmp.lt.s32.totalorder %s38_s9, %s38_s9 }
  0x2a   :  { %p322_p5 = scmp.ne.s32.totalorder %s38_s9, %s321_s18  ;;  %p327_p7 = scmp.lt.s32.totalorder %s321_s18, %s321_s18 }
  0x2c   :  { %p328_p8 = por %p327_p7, %p326_p6 }
  0x2e   :  { %p329_p9 = pnand %p328_p8, %p322_p5 }
  0x30   :  { %332 = shalt.err (!%p329_p9)
}
  0x31   :  { %40 = dma.hbm_to_vmem [thread:$0]  %s447_s2, 128, %s38_s9, [#allocation8]  }
  0x32   :  { %355 = dma.done.wait [#allocation5], 128  }
  0x33   :  { %356 = vsyncadd [#allocation5], 4294967168 }
  0x34   :  { %357 = dma.done.wait [#allocation8], 256  }
  0x35   :  { %358 = vsyncadd [#allocation8], 4294967040  ;;  %v56_v0 = vld [vmem:[#allocation9] sm:$0xff]  ;;  %vm58_vm0 = vcmask 261120   ;;  %v75_v1 = vld [vmem:[#allocation7] sm:$0xff]  ;;  %vm54_vm1 = vcmask 0   ;;  %v170_v25 = vlaneseq }
  0x36   :  { %v66_v2 = vld [vmem:[#allocation4] sm:$0xff]  ;;  %v57_v3 = vmul.f32 %v56_v0, %v56_v0  ;;  %v76_v4 = vmul.f32 %v75_v1, %v75_v1  ;;  %v364_v9 = vmov 0.0   ;;  %vm365_vm2 = vmmov 0   ;;  %s366_s19 = smov [#allocation10]  }
  0x37   :  { %v67_v5 = vmul.f32 %v66_v2, %v66_v2  ;;  %55 = vst.msk [vmem:[#allocation3] sm:$0x1] %vm54_vm1, %v364_v9  ;;  %242 = vmatprep.subr.mxu0 %v364_v9  ;;  %244 = vmatprep.mubr.msk.f32.mxu0 %vm365_vm2, %v364_v9  ;;  %v171_v26 = vshrl.u32 %v170_v25, 7  ;;  %v183_v32 = vand.u32 127, %v170_v25  ;;  %vm189_vm6 = vcmask 64512   ;;  %s228_s20 = sshll.u32 %s366_s19, 4  ;;  %s229_s20 = int_to_ptr.vmem [resolvable:$true] %s228_s20 }
  0x38   :  { %v59_v6 = vsel %vm58_vm0, %v57_v3, 0.0  ;;  %v77_v7 = vsel %vm58_vm0, %v76_v4, 0.0  ;;  %vm200_vm7 = vcmask 7168   ;;  %s333_s21 = scalar_lea.vmem %s229_s20, 16  ;;  %s337_s22 = scalar_lea.vmem %s229_s20, 32 }
  0x39   :  { %60 = vadd.xlane.f32.xlu0 %v59_v6  ;;  %78 = vadd.xlane.f32.xlu1 %v77_v7  ;;  %v69_v8 = vsel %vm58_vm0, %v67_v5, 0.0  ;;  %v179_v30 = vand.u32 3, %v171_v26  ;;  %p334_p10 = scmp.ne.s32.totalorder %s229_s20, %s333_s21  ;;  %p338_p11 = scmp.lt.s32.totalorder %s229_s20, %s229_s20 }
  0x3a   :  { %p339_p12 = scmp.lt.s32.totalorder %s337_s22, %s333_s21 }
  0x3b   :  { %v185_v33 = vadd.s32 4, %v179_v30  ;;  %vm184_vm3 = vcmp.eq.s32.totalorder %v183_v32, %v179_v30 }
  0x3c   :  { %p340_p13 = por %p339_p12, %p338_p11 }
  0x3d   :  { %70 = vadd.xlane.f32.xlu0 %v69_v8  ;;  %vm186_vm4 = vcmp.eq.s32.totalorder %v183_v32, %v185_v33 }
  0x3e   :  { %vm187_vm5 = vmor %vm184_vm3, %vm186_vm4  ;;  %v199_v54 = vld [vmem:[#allocation3] sm:$0x1]  ;;  %p341_p0 = pnand %p340_p13, %p334_p10 }
  0xc6   :  { %v61_v10 = vpop.xlane.xlu0 %60  ;;  %v79_v11 = vpop.xlane.xlu1 %78 }
  0xc7   :  { %v62_v12 = vmax.f32 %v61_v10, 1e-24  ;;  %v80_v13 = vmax.f32 %v79_v11, 1e-24 }
  0xc9   :  { %255 = vrsqrt.f32 %v62_v12 }
  0xca   :  { %257 = vrsqrt.f32 %v80_v13  ;;  %v71_v14 = vpop.xlane.xlu0 %70 }
  0xcb   :  { %v72_v15 = vmax.f32 %v71_v14, 1e-24 }
  0xcd   :  { %259 = vrsqrt.f32 %v72_v15 }
  0xd3   :  { %v256_v16 = vpop.eup %255 }
  0xd4   :  { %v258_v17 = vpop.eup %257  ;;  %v64_v18 = vmul.f32 %v256_v16, %v56_v0 }
  0xd5   :  { %v82_v19 = vmul.f32 %v258_v17, %v75_v1 }
  0xd6   :  { %65 = vst.msk [vmem:[#allocation2] sm:$0xff] %vm58_vm0, %v64_v18 }
  0xd7   :  { %v260_v20 = vpop.eup %259 }
  0xd8   :  { %v74_v21 = vmul.f32 %v260_v20, %v66_v2 }
  0xda   :  { %v84_v22 = vmul.f32 %v82_v19, %v74_v21 }
  0xdc   :  { %v85_v23 = vsel %vm58_vm0, %v84_v22, 0.0 }
  0xdd   :  { %v83_v24 = vld [vmem:[#allocation2] sm:$0xff]  ;;  %86 = vadd.xlane.f32.xlu1 %v85_v23 }
  0xde   :  { %243 = vmatpush3.xpose.msk.msra.mxu0 %vm58_vm0, %v83_v24 }
  0xe1   :  { %245 = vmatmul.mubr.msk.f32.vlgmr.msra.gmra.mrb[0].mxu0 %vm58_vm0, %v74_v21 }
 0x16a   :  { %v87_v37 = vpop.xlane.xlu1 %86 }
 0x16b   :  { %v88_v38 = vmul.f32 10.0, %v87_v37 }
 0x16d   :  { %v89_v39 = vmul.f32 1.442695, %v88_v38 }
 0x1b4   :  { %v163_v27 = vpop.f32.mrb[0].mxu0 }
 0x1b5   :  { %v167_v28 = vmul.f32 10.0, %v163_v27  ;;  %v246_v29 = vpop.f32.mrb[1].mxu0 }
 0x1b7   :  { %v168_v31 = vmul.f32 1.442695, %v167_v28 }
 0x1b9   :  { %261 = vpow2.f32 %v168_v31 }
 0x1ba   :  { %263 = vpow2.f32 %v89_v39 }
 0x1c3   :  { %v262_v34 = vpop.eup %261 }
 0x1c4   :  { %v188_v35 = vsel %vm187_vm5, 0.0, %v262_v34  ;;  %v264_v40 = vpop.eup %263 }
 0x1c5   :  { %v190_v36 = vsel %vm189_vm6, %v188_v35, 0.0 }
 0x1c6   :  { %191 = vadd.xlane.f32.xlu0 %v190_v36 }
 0x253   :  { %v192_v41 = vpop.xlane.xlu0 %191 }
 0x254   :  { %v194_v42 = vadd.f32 %v264_v40, %v192_v41 }
 0x256   :  { %265 = vlog2.f32 %v194_v42 }
 0x260   :  { %v266_v43 = vpop.eup %265 }
 0x261   :  { %v196_v44 = vmul.f32 0.6931472, %v266_v43 }
 0x263   :  { %v197_v45 = vsub.f32 %v88_v38, %v196_v44 }
 0x265   :  { %v201_v46 = vsel %vm200_vm7, %v197_v45, 0.0 }
 0x266   :  { %202 = vadd.xlane.f32.xlu1 %v201_v46 }
 0x2f3   :  { %v203_v47 = vpop.xlane.xlu1 %202 }
 0x2f4   :  { %v204_v48 = vrot.slane %v203_v47, 4 }
 0x2f6   :  { %v205_v49 = vadd.f32 %v204_v48, %v203_v47 }
 0x2f8   :  { %v206_v50 = vrot.slane %v205_v49, 2 }
 0x2fa   :  { %v207_v51 = vadd.f32 %v206_v50, %v205_v49 }
 0x2fc   :  { %v208_v52 = vrot.slane %v207_v51, 1 }
 0x2fe   :  { %v209_v53 = vadd.f32 %v208_v52, %v207_v51 }
 0x300   :  { %247 = vpush %v209_v53 }
 0x331   :  { %s248_s2 = spop %247 }
 0x332   :  { %v211_v55 = vstv %s248_s2 }
 0x333   :  { %v212_v56 = vadd.f32 %v211_v55, %v199_v54 }
 0x335   :  { %214 = vst.msk [vmem:[#allocation3] sm:$0x1] %vm54_vm1, %v212_v56 }
 0x33c   :  { %v218_v57 = vld [vmem:[#allocation3] sm:$0x1] }
 0x33d   :  { %v219_v58 = vsub.f32 0.0, %v218_v57 }
 0x33f   :  { %v220_v59 = vmul.f32 0.125, %v219_v58 }
 0x341   :  { %221 = vst.msk [vmem:[#allocation10] sm:$0x1] %vm54_vm1, %v220_v59 }
 0x342   :  { %344 = shalt.err (!%p341_p0)
}
 0x343   :  { %s345_s25 = scalar_lea.hbm %s448_s3, 16 }
 0x344   :  { %p346_p1 = scmp.ne.s32.totalorder %s448_s3, %s345_s25  ;;  %p349_p2 = scmp.lt.u32.totalorder %s345_s25, %s448_s3 }
 0x346   :  { %p351_p3 = pnand %p349_p2, %p346_p1 }
 0x348   :  { %354 = shalt.err (!%p351_p3)
}
 0x349   :  { %231 = dma.vmem_to_hbm [thread:$0]  %s229_s20, 16, %s448_s3, [#allocation6]  }
 0x34a   :  { %359 = dma.done.wait [#allocation6], 16  }
 0x34b   :  { %360 = vsyncadd [#allocation6], 4294967280 }
 0x34c   :  { %235 = vsyncpa [#allocation5], 1 }
 0x34d   :  { %236 = vsyncpa [#allocation8], 1 }
 0x34e   :  { %237 = vsyncpa [#allocation6], 1 }

</bundles_post_ra>
